<compile_context>
chip_gen: v5e
topology: v5e:2x2
jax: 0.10.0
libtpu: 0.0.40
codegen_flags: <defaults>
</compile_context>

<pallas_src>
import jax
import jax.numpy as jnp
from jax.experimental import pallas as pl
from jax.experimental.pallas import tpu as pltpu


def _leaky_relu(x, slope=0.2):
    return jnp.where(x > 0, x, slope * x)


def _round_up(x, m):
    return ((x + m - 1) // m) * m


def mlp_g_img_kernel(x_ref, w0_ref, b0_ref, w1_ref, b1_ref, w2_ref, b2_ref,
                     o_ref, h_ref):
    """One (TB, TN) output tile of the 3-layer MLP generator."""
    # fc0 + LeakyReLU, fc1 + LeakyReLU: run once per batch tile (nx is the
    # innermost grid axis) and cache the hidden state in VMEM scratch.
    @pl.when(pl.program_id(1) == 0)
    def _():
        h = jnp.dot(x_ref[...], w0_ref[...], preferred_element_type=jnp.float32)
        h = _leaky_relu(h + b0_ref[...])
        h = jnp.dot(h, w1_ref[...], preferred_element_type=jnp.float32)
        h = _leaky_relu(h + b1_ref[...])
        h_ref[...] = h                                           # (TB, W) f32

    # Output layer for this nx tile + Tanh (f32 accumulate, f32 elementwise).
    h = h_ref[...].astype(w2_ref.dtype)
    y = jnp.dot(h, w2_ref[...], preferred_element_type=jnp.float32)
    o_ref[...] = jnp.tanh(y + b2_ref[...].astype(jnp.float32))   # (TB, TN)


def mlp_g_img_forward(x_nchw, params, nc, isize, *, tb_max=256, tn_max=2048,
                      w2_bf16=False):
    """x_nchw: (B, nz, 1, 1) float32.  Returns (B, nc, isize, isize) float32."""
    B = x_nchw.shape[0]
    nz = x_nchw.shape[1]
    x = x_nchw.reshape(B, nz).astype(jnp.float32)                # view(B, nz)

    w0, b0, w1, b1, w2, b2 = params
    W = w0.shape[1]
    nx = w2.shape[1]

    # --- tile sizes (sublane granularity 8, lane granularity 128) ---
    Bp = _round_up(B, 8)
    TB = min(tb_max, Bp)
    Bp = _round_up(Bp, TB)
    nxp = _round_up(nx, 128)
    TN = min(tn_max, nxp)
    nxp = _round_up(nxp, TN)

    # Zero-pad: padded batch rows / output columns only produce tanh(0 + 0)
    # garbage that is sliced off below.
    if Bp != B:
        x = jnp.pad(x, ((0, Bp - B), (0, 0)))
    if nxp != nx:
        w2 = jnp.pad(w2, ((0, 0), (0, nxp - nx)))
        b2 = jnp.pad(b2, ((0, 0), (0, nxp - nx)))
    if w2_bf16:
        w2 = w2.astype(jnp.bfloat16)   # halves dominant weight HBM/VMEM traffic

    grid = (Bp // TB, nxp // TN)

    cost = pl.CostEstimate(
        flops=2 * Bp * (nz * W + W * W + W * nxp),
        transcendentals=Bp * nxp,                                # tanh
        bytes_accessed=(Bp * nz + w0.size + b0.size + w1.size + b1.size
                        + b2.size + Bp * nxp) * 4
                       + w2.size * w2.dtype.itemsize,
    )

    out = pl.pallas_call(
        mlp_g_img_kernel,
        out_shape=jax.ShapeDtypeStruct((Bp, nxp), jnp.float32),
        grid_spec=pltpu.PrefetchScalarGridSpec(
            num_scalar_prefetch=0,
            grid=grid,
            in_specs=[
                pl.BlockSpec((TB, nz), lambda i, j: (i, 0)),     # x  (batch tile)
                pl.BlockSpec((nz, W), lambda i, j: (0, 0)),      # w0 (resident)
                pl.BlockSpec((1, W), lambda i, j: (0, 0)),       # b0 (resident)
                pl.BlockSpec((W, W), lambda i, j: (0, 0)),       # w1 (resident)
                pl.BlockSpec((1, W), lambda i, j: (0, 0)),       # b1 (resident)
                pl.BlockSpec((W, TN), lambda i, j: (0, j)),      # w2 (nx tile)
                pl.BlockSpec((1, TN), lambda i, j: (0, j)),      # b2 (nx tile)
            ],
            out_specs=pl.BlockSpec((TB, TN), lambda i, j: (i, j)),
            scratch_shapes=[pltpu.VMEM((TB, W), jnp.float32)],   # cached hidden h
        ),
        compiler_params=pltpu.CompilerParams(
            dimension_semantics=("parallel", "arbitrary")),
        cost_estimate=cost,
    )(x, w0, b0, w1, b1, w2, b2)

    return out[:B, :nx].reshape(B, nc, isize, isize)             # NCHW output


def init_params(key, nz, width, nx):
    """Deterministic init; weights stored as (in, out) so kernel does x @ W."""
    ks = jax.random.split(key, 6)

    def linear(kw, kb, fan_in, fan_out):
        # Mimic torch.nn.Linear default init: U(-1/sqrt(fan_in), 1/sqrt(fan_in))
        bound = 1.0 / jnp.sqrt(jnp.float32(fan_in))
        w = jax.random.uniform(kw, (fan_in, fan_out), jnp.float32, -bound, bound)
        b = jax.random.uniform(kb, (1, fan_out), jnp.float32, -bound, bound)
        return w, b

    w0, b0 = linear(ks[0], ks[1], nz, width)
    w1, b1 = linear(ks[2], ks[3], width, width)
    w2, b2 = linear(ks[4], ks[5], width, nx)
    return (w0, b0, w1, b1, w2, b2)


if __name__ == "__main__":
    # Small shapes consistent with the module defaults (depth=3).
    B, nz, nc, isize, width = 2, 8, 4, 16, 32
    nx = nc * isize * isize

    key = jax.random.PRNGKey(0)
    k_x, k_p = jax.random.split(key)

    x = jax.random.normal(k_x, (B, nz, 1, 1), dtype=jnp.float32)  # NCHW latent
    params = init_params(k_p, nz, width, nx)

    out = mlp_g_img_forward(x, params, nc, isize)
    out = jax.block_until_ready(out)

    assert out.shape == (B, nc, isize, isize), out.shape
    # Reference check in plain JAX (f32 everywhere, tight tolerance).
    w0, b0, w1, b1, w2, b2 = params
    xr = x.reshape(B, nz)
    h = xr @ w0 + b0
    h = jnp.where(h > 0, h, 0.2 * h)
    h = h @ w1 + b1
    h = jnp.where(h > 0, h, 0.2 * h)
    ref = jnp.tanh(h @ w2 + b2).reshape(B, nc, isize, isize)
    assert jnp.allclose(out, ref, atol=1e-5), float(jnp.max(jnp.abs(out - ref)))

    print("KERNEL_OK")
</pallas_src>

<mosaic_0001>
module attributes {stable_mosaic.version = 11 : i64} {
  func.func @mlp_g_img_kernel(%arg0: i32, %arg1: i32, %arg2: memref<8x8xf32, #tpu.memory_space<vmem>>, %arg3: memref<8x32xf32, #tpu.memory_space<vmem>>, %arg4: memref<1x32xf32, #tpu.memory_space<vmem>>, %arg5: memref<32x32xf32, #tpu.memory_space<vmem>>, %arg6: memref<1x32xf32, #tpu.memory_space<vmem>>, %arg7: memref<32x1024xf32, #tpu.memory_space<vmem>>, %arg8: memref<1x1024xf32, #tpu.memory_space<vmem>>, %arg9: memref<8x1024xf32, #tpu.memory_space<vmem>>, %arg10: memref<8x32xf32, #tpu.memory_space<vmem>>) attributes {dimension_semantics = [#tpu.dimension_semantics<parallel>, #tpu.dimension_semantics<arbitrary>], iteration_bounds = array<i64: 1, 1>, scalar_prefetch = 0 : i64, scratch_operands = 1 : i64, tpu.core_type = #tpu.core_type<tc>, window_params = [{transform_indices = @transform_0, window_bounds = array<i64: 8, 8>}, {pipeline_mode = #tpu.pipeline_mode<synchronous>, transform_indices = @transform_1, window_bounds = array<i64: 8, 32>}, {pipeline_mode = #tpu.pipeline_mode<synchronous>, transform_indices = @transform_2, window_bounds = array<i64: 1, 32>}, {pipeline_mode = #tpu.pipeline_mode<synchronous>, transform_indices = @transform_3, window_bounds = array<i64: 32, 32>}, {pipeline_mode = #tpu.pipeline_mode<synchronous>, transform_indices = @transform_4, window_bounds = array<i64: 1, 32>}, {transform_indices = @transform_5, window_bounds = array<i64: 32, 1024>}, {transform_indices = @transform_6, window_bounds = array<i64: 1, 1024>}, {transform_indices = @transform_7, window_bounds = array<i64: 8, 1024>}]} {
    %c0_i32 = arith.constant 0 : i32
    %0 = arith.cmpi eq, %arg1, %c0_i32 : i32
    %1 = arith.extui %0 : i1 to i32
    %c0_i32_0 = arith.constant 0 : i32
    %2 = arith.cmpi ne, %1, %c0_i32_0 : i32
    scf.if %2 {
      %c0_8 = arith.constant 0 : index
      %c0_9 = arith.constant 0 : index
      %11 = vector.load %arg2[%c0_8, %c0_9] : memref<8x8xf32, #tpu.memory_space<vmem>>, vector<8x8xf32>
      %c0_10 = arith.constant 0 : index
      %c0_11 = arith.constant 0 : index
      %12 = vector.load %arg3[%c0_10, %c0_11] : memref<8x32xf32, #tpu.memory_space<vmem>>, vector<8x32xf32>
      %cst_12 = arith.constant dense<0.000000e+00> : vector<8x32xf32>
      %13 = tpu.matmul %11, %12, %cst_12 {dimension_numbers = #tpu.dot_dimension_numbers<[1], [0], [0], [1], [0, 0, 1, 1], [], []>} : vector<8x8xf32>, vector<8x32xf32>, vector<8x32xf32> -> vector<8x32xf32>
      %c0_13 = arith.constant 0 : index
      %c0_14 = arith.constant 0 : index
      %14 = vector.load %arg4[%c0_13, %c0_14] : memref<1x32xf32, #tpu.memory_space<vmem>>, vector<1x32xf32>
      %15 = vector.broadcast %14 : vector<1x32xf32> to vector<8x32xf32>
      %16 = arith.addf %13, %15 : vector<8x32xf32>
      %cst_15 = arith.constant 0.000000e+00 : f32
      %17 = vector.broadcast %cst_15 : f32 to vector<8x32xf32>
      %18 = arith.cmpf ogt, %16, %17 : vector<8x32xf32>
      %cst_16 = arith.constant 2.000000e-01 : f32
      %19 = vector.broadcast %cst_16 : f32 to vector<8x32xf32>
      %20 = arith.mulf %19, %16 : vector<8x32xf32>
      %21 = arith.select %18, %16, %20 : vector<8x32xi1>, vector<8x32xf32>
      %c0_17 = arith.constant 0 : index
      %c0_18 = arith.constant 0 : index
      %22 = vector.load %arg5[%c0_17, %c0_18] : memref<32x32xf32, #tpu.memory_space<vmem>>, vector<32x32xf32>
      %cst_19 = arith.constant dense<0.000000e+00> : vector<8x32xf32>
      %23 = tpu.matmul %21, %22, %cst_19 {dimension_numbers = #tpu.dot_dimension_numbers<[1], [0], [0], [1], [0, 0, 1, 1], [], []>} : vector<8x32xf32>, vector<32x32xf32>, vector<8x32xf32> -> vector<8x32xf32>
      %c0_20 = arith.constant 0 : index
      %c0_21 = arith.constant 0 : index
      %24 = vector.load %arg6[%c0_20, %c0_21] : memref<1x32xf32, #tpu.memory_space<vmem>>, vector<1x32xf32>
      %25 = vector.broadcast %24 : vector<1x32xf32> to vector<8x32xf32>
      %26 = arith.addf %23, %25 : vector<8x32xf32>
      %cst_22 = arith.constant 0.000000e+00 : f32
      %27 = vector.broadcast %cst_22 : f32 to vector<8x32xf32>
      %28 = arith.cmpf ogt, %26, %27 : vector<8x32xf32>
      %cst_23 = arith.constant 2.000000e-01 : f32
      %29 = vector.broadcast %cst_23 : f32 to vector<8x32xf32>
      %30 = arith.mulf %29, %26 : vector<8x32xf32>
      %31 = arith.select %28, %26, %30 : vector<8x32xi1>, vector<8x32xf32>
      %c0_24 = arith.constant 0 : index
      %c0_25 = arith.constant 0 : index
      %32 = vector.load %arg10[%c0_24, %c0_25] : memref<8x32xf32, #tpu.memory_space<vmem>>, vector<8x32xf32>
      tpu.vector_store %arg10[%c0_24, %c0_25], %31 {strides = array<i32>} : memref<8x32xf32, #tpu.memory_space<vmem>>, vector<8x32xf32>,
    } else {
    }
    %c0 = arith.constant 0 : index
    %c0_1 = arith.constant 0 : index
    %3 = vector.load %arg10[%c0, %c0_1] : memref<8x32xf32, #tpu.memory_space<vmem>>, vector<8x32xf32>
    %c0_2 = arith.constant 0 : index
    %c0_3 = arith.constant 0 : index
    %4 = vector.load %arg7[%c0_2, %c0_3] : memref<32x1024xf32, #tpu.memory_space<vmem>>, vector<32x1024xf32>
    %cst = arith.constant dense<0.000000e+00> : vector<8x1024xf32>
    %5 = tpu.matmul %3, %4, %cst {dimension_numbers = #tpu.dot_dimension_numbers<[1], [0], [0], [1], [0, 0, 1, 1], [], []>} : vector<8x32xf32>, vector<32x1024xf32>, vector<8x1024xf32> -> vector<8x1024xf32>
    %c0_4 = arith.constant 0 : index
    %c0_5 = arith.constant 0 : index
    %6 = vector.load %arg8[%c0_4, %c0_5] : memref<1x1024xf32, #tpu.memory_space<vmem>>, vector<1x1024xf32>
    %7 = vector.broadcast %6 : vector<1x1024xf32> to vector<8x1024xf32>
    %8 = arith.addf %5, %7 : vector<8x1024xf32>
    %9 = math.tanh %8 : vector<8x1024xf32>
    %c0_6 = arith.constant 0 : index
    %c0_7 = arith.constant 0 : index
    %10 = vector.load %arg9[%c0_6, %c0_7] : memref<8x1024xf32, #tpu.memory_space<vmem>>, vector<8x1024xf32>
    tpu.vector_store %arg9[%c0_6, %c0_7], %9 {strides = array<i32>} : memref<8x1024xf32, #tpu.memory_space<vmem>>, vector<8x1024xf32>,
    return
  }
  func.func @transform_0(%arg0: i32, %arg1: i32) -> (i32, i32) {
    %c0_i32 = arith.constant 0 : i32
    %c0_i32_0 = arith.constant 0 : i32
    return %arg0, %c0_i32 : i32, i32
  }
  func.func @transform_1(%arg0: i32, %arg1: i32) -> (i32, i32) {
    %c0_i32 = arith.constant 0 : i32
    %c0_i32_0 = arith.constant 0 : i32
    %c0_i32_1 = arith.constant 0 : i32
    return %c0_i32, %c0_i32_0 : i32, i32
  }
  func.func @transform_2(%arg0: i32, %arg1: i32) -> (i32, i32) {
    %c0_i32 = arith.constant 0 : i32
    %c0_i32_0 = arith.constant 0 : i32
    %c0_i32_1 = arith.constant 0 : i32
    return %c0_i32, %c0_i32_0 : i32, i32
  }
  func.func @transform_3(%arg0: i32, %arg1: i32) -> (i32, i32) {
    %c0_i32 = arith.constant 0 : i32
    %c0_i32_0 = arith.constant 0 : i32
    %c0_i32_1 = arith.constant 0 : i32
    return %c0_i32, %c0_i32_0 : i32, i32
  }
  func.func @transform_4(%arg0: i32, %arg1: i32) -> (i32, i32) {
    %c0_i32 = arith.constant 0 : i32
    %c0_i32_0 = arith.constant 0 : i32
    %c0_i32_1 = arith.constant 0 : i32
    return %c0_i32, %c0_i32_0 : i32, i32
  }
  func.func @transform_5(%arg0: i32, %arg1: i32) -> (i32, i32) {
    %c0_i32 = arith.constant 0 : i32
    %c0_i32_0 = arith.constant 0 : i32
    return %c0_i32, %arg1 : i32, i32
  }
  func.func @transform_6(%arg0: i32, %arg1: i32) -> (i32, i32) {
    %c0_i32 = arith.constant 0 : i32
    %c0_i32_0 = arith.constant 0 : i32
    return %c0_i32, %arg1 : i32, i32
  }
  func.func @transform_7(%arg0: i32, %arg1: i32) -> (i32, i32) {
    %c0_i32 = arith.constant 0 : i32
    return %arg0, %arg1 : i32, i32
  }
}

</mosaic_0001>

<bundles_post_ra>
// kernel: tpu_custom_call.1
= control target key start
LH: loop header
LB: loop body
LE: loop exit
PB: predicated region body
PF: predicated region fallthrough
CT: control target
= control target key end

     0   :  { %12 = vsyncpa [#allocation4], 0  ;;  %s696_s0 = inlined_call_operand.hbm [shape: f32[8,8], index: 0, kind: input, shape index: {}]   ;;  %s697_s1 = inlined_call_operand.hbm [shape: f32[8,32], index: 1, kind: input, shape index: {}]   ;;  %s698_s2 = inlined_call_operand.vmem [shape: f32[1,32], index: 2, kind: input, shape index: {}]   ;;  %s699_s3 = inlined_call_operand.hbm [shape: f32[32,32], index: 3, kind: input, shape index: {}]   ;;  %s700_s4 = inlined_call_operand.vmem [shape: f32[1,32], index: 4, kind: input, shape index: {}]   ;;  %s701_s5 = inlined_call_operand.hbm [shape: f32[32,1024], index: 5, kind: input, shape index: {}]   ;;  %s702_s6 = inlined_call_operand.hbm [shape: f32[1,1024], index: 6, kind: input, shape index: {}]   ;;  %s703_s7 = inlined_call_operand.hbm [shape: f32[8,1024], index: 7, kind: output, shape index: {}]  }
   0x1   :  { %13 = vsyncpa [#allocation7], 0 }
   0x2   :  { %14 = vsyncpa [#allocation10], 0  ;;  %s32_s26 = sshll.u32 %s697_s1, 4  ;;  %s33_s26 = int_to_ptr.hbm [resolvable:$true] %s32_s26 }
   0x3   :  { %15 = vsyncpa [#allocation5], 0  ;;  %s612_s27 = smov [#allocation6]   ;;  %s59_s8 = sshll.u32 %s701_s5, 4  ;;  %s60_s8 = int_to_ptr.hbm [resolvable:$true] %s59_s8 }
   0x4   :  { %s34_s28 = sshll.u32 %s612_s27, 4  ;;  %s613_s9 = smov [#allocation9]   ;;  %s35_s28 = int_to_ptr.vmem [resolvable:$true] %s34_s28 }
   0x5   :  { %37 = dma.hbm_to_vmem [thread:$0]  %s33_s26, 128, %s35_s28, [#allocation7]  }
   0x6   :  { %s61_s10 = sshll.u32 %s613_s9, 4  ;;  %s614_s11 = smov 1024   ;;  %s62_s10 = int_to_ptr.vmem [resolvable:$true] %s61_s10 }
   0x7   :  { %s615_s12 = smov 64   ;;  %s21_s1 = sshll.u32 %s696_s0, 4  ;;  %s22_s1 = int_to_ptr.hbm [resolvable:$true] %s21_s1 }
   0x8   :  { %67 = dma.hbm_to_vmem [thread:$0]  %s60_s8, 4096, %s62_s10, [#allocation10], %s614_s11, %s614_s11, %s615_s12  }
   0x9   :  { %s616_s15 = smov [#allocation3]   ;;  %s44_s5 = sshll.u32 %s699_s3, 4  ;;  %s45_s5 = int_to_ptr.hbm [resolvable:$true] %s44_s5 }
   0xa   :  { %s23_s16 = sshll.u32 %s616_s15, 4  ;;  %s617_s19 = smov [#allocation8]   ;;  %s24_s16 = int_to_ptr.vmem [resolvable:$true] %s23_s16 }
   0xb   :  { %26 = dma.hbm_to_vmem [thread:$0]  %s22_s1, 128, %s24_s16, [#allocation4]  }
   0xc   :  { %s46_s20 = sshll.u32 %s617_s19, 4  ;;  %s618_s21 = smov 128   ;;  %s47_s20 = int_to_ptr.vmem [resolvable:$true] %s46_s20 }
   0xd   :  { %s619_s22 = smov 8   ;;  %s73_s0 = sshll.u32 %s702_s6, 4  ;;  %s74_s0 = int_to_ptr.hbm [resolvable:$true] %s73_s0 }
   0xe   :  { %52 = dma.hbm_to_vmem [thread:$0]  %s45_s5, 512, %s47_s20, [#allocation7], %s618_s21, %s618_s21, %s619_s22  }
   0xf   :  { %s620_s25 = smov [#allocation11]  }
  0x10   :  { %s75_s26 = sshll.u32 %s620_s25, 4  ;;  %s76_s26 = int_to_ptr.vmem [resolvable:$true] %s75_s26 }
  0x11   :  { %78 = dma.hbm_to_vmem [thread:$0]  %s74_s0, 128, %s76_s26, [#allocation10]  }
  0x12   :  { %604 = dma.done.wait [#allocation4], 128  }
  0x13   :  { %605 = vsyncadd [#allocation4], 4294967168 }
  0x14   :  { %606 = dma.done.wait [#allocation7], 640  }
  0x15   :  { %607 = vsyncadd [#allocation7], 4294966656 }
  0x16   :  { %608 = dma.done.wait [#allocation10], 4224  }
  0x17   :  { %609 = vsyncadd [#allocation10], 4294963072  ;;  %vm109_vm0 = vcmask 64512   ;;  %v104_v0 = vld [vmem:[#allocation6] sm:$0xff]  ;;  %v103_v1 = vld [vmem:[#allocation3] sm:$0xff]  ;;  %vm144_vm2 = vcmask 261120  }
  0x18   :  { %v139_v2 = vld [vmem:[#allocation8 + $0x18] sm:$0xff]  ;;  %128 = vmatpush.msra.mxu0 %v104_v0  ;;  %v138_v3 = vld [vmem:[#allocation8 + $0x10] sm:$0xff]  ;;  %v137_v4 = vld [vmem:[#allocation8 + $0x8] sm:$0xff]  ;;  %s410_s8 = sshll.u32 %s703_s7, 4  ;;  %s411_s8 = int_to_ptr.hbm [resolvable:$true] %s410_s8 }
  0x19   :  { %160 = vmatpush.msra.mxu1 %v139_v2  ;;  %422 = vmatmul.msk.f32.vlgmr.msra.gmra.mxu0 %vm109_vm0, %v103_v1  ;;  %v136_v5 = vld [vmem:[#allocation8] sm:$0xff]  ;;  %v442_v6 = vld [vmem:[%s698_s2] ss:$0 sm:$0xff]  ;;  %v199_v13 = vld [vmem:[#allocation9 + $0xd0] sm:$0xff] }
  0x1a   :  { %v197_v11 = vld [vmem:[#allocation9 + $0xc0] sm:$0xff]  ;;  %v198_v12 = vld [vmem:[#allocation9 + $0xc8] sm:$0xff]  ;;  %v200_v14 = vld [vmem:[#allocation9 + $0xd8] sm:$0xff]  ;;  %279 = vmatpush.msrb.mxu0 %v199_v13 }
  0x1b   :  { %161 = vmatpush.msra.mxu1 %v138_v3  ;;  %239 = vmatpush.msra.mxu2 %v197_v11  ;;  %v189_v15 = vld [vmem:[#allocation9 + $0x80] sm:$0xff]  ;;  %v190_v16 = vld [vmem:[#allocation9 + $0x88] sm:$0xff]  ;;  %v191_v17 = vld [vmem:[#allocation9 + $0x90] sm:$0xff] }
  0x1c   :  { %259 = vmatpush.msra.mxu3 %v198_v12  ;;  %v192_v18 = vld [vmem:[#allocation9 + $0x98] sm:$0xff]  ;;  %v181_v19 = vld [vmem:[#allocation9 + $0x40] sm:$0xff]  ;;  %v182_v20 = vld [vmem:[#allocation9 + $0x48] sm:$0xff]  ;;  %280 = vmatpush.msrb.mxu0 %v191_v17 }
  0x1d   :  { %162 = vmatpush.msra.mxu1 %v137_v4  ;;  %240 = vmatpush.msra.mxu2 %v189_v15  ;;  %v183_v21 = vld [vmem:[#allocation9 + $0x50] sm:$0xff]  ;;  %v184_v22 = vld [vmem:[#allocation9 + $0x58] sm:$0xff]  ;;  %v173_v23 = vld [vmem:[#allocation9] sm:$0xff] }
  0x1e   :  { %260 = vmatpush.msra.mxu3 %v190_v16  ;;  %v174_v24 = vld [vmem:[#allocation9 + $0x8] sm:$0xff]  ;;  %v175_v25 = vld [vmem:[#allocation9 + $0x10] sm:$0xff]  ;;  %v176_v26 = vld [vmem:[#allocation9 + $0x18] sm:$0xff]  ;;  %281 = vmatpush.msrb.mxu0 %v183_v21 }
  0x1f   :  { %163 = vmatpush.msra.mxu1 %v136_v5  ;;  %241 = vmatpush.msra.mxu2 %v181_v19  ;;  %v201_v27 = vld [vmem:[#allocation9 + $0xe0] sm:$0xff]  ;;  %v202_v28 = vld [vmem:[#allocation9 + $0xe8] sm:$0xff]  ;;  %v203_v29 = vld [vmem:[#allocation9 + $0xf0] sm:$0xff] }
  0x20   :  { %261 = vmatpush.msra.mxu3 %v182_v20  ;;  %282 = vmatpush.msrb.mxu0 %v175_v25  ;;  %v204_v30 = vld [vmem:[#allocation9 + $0xf8] sm:$0xff]  ;;  %v193_v31 = vld [vmem:[#allocation9 + $0xa0] sm:$0xff]  ;;  %v194_v32 = vld [vmem:[#allocation9 + $0xa8] sm:$0xff] }
  0x21   :  { %299 = vmatpush.msrb.mxu1 %v200_v14  ;;  %242 = vmatpush.msra.mxu2 %v173_v23  ;;  %v195_v33 = vld [vmem:[#allocation9 + $0xb0] sm:$0xff]  ;;  %v196_v34 = vld [vmem:[#allocation9 + $0xb8] sm:$0xff]  ;;  %v185_v35 = vld [vmem:[#allocation9 + $0x60] sm:$0xff] }
  0x22   :  { %262 = vmatpush.msra.mxu3 %v174_v24  ;;  %359 = vmatpush.msra.mxu0 %v203_v29  ;;  %v186_v36 = vld [vmem:[#allocation9 + $0x68] sm:$0xff]  ;;  %v187_v37 = vld [vmem:[#allocation9 + $0x70] sm:$0xff]  ;;  %v188_v38 = vld [vmem:[#allocation9 + $0x78] sm:$0xff] }
  0x23   :  { %300 = vmatpush.msrb.mxu1 %v192_v18  ;;  %319 = vmatpush.msrb.mxu2 %v201_v27  ;;  %v177_v39 = vld [vmem:[#allocation9 + $0x20] sm:$0xff]  ;;  %v178_v40 = vld [vmem:[#allocation9 + $0x28] sm:$0xff]  ;;  %v179_v41 = vld [vmem:[#allocation9 + $0x30] sm:$0xff] }
  0x24   :  { %339 = vmatpush.msrb.mxu3 %v202_v28  ;;  %360 = vmatpush.msra.mxu0 %v195_v33  ;;  %v180_v42 = vld [vmem:[#allocation9 + $0x38] sm:$0xff]  ;;  %v443_v43 = vld [vmem:[%s700_s4] ss:$0 sm:$0xff]  ;;  %v205_v49 = vld [vmem:[#allocation11] sm:$0xff]  ;;  %s621_s4 = smov [#allocation12]  }
  0x25   :  { %301 = vmatpush.msrb.mxu1 %v184_v22  ;;  %320 = vmatpush.msrb.mxu2 %v193_v31  ;;  %v209_v50 = vperm.slane %v205_v49, 2  ;;  %v210_v51 = vperm.slane %v205_v49, 3  ;;  %v207_v56 = vperm.slane %v205_v49, 0  ;;  %v208_v57 = vperm.slane %v205_v49, 1  ;;  %s408_s28 = sshll.u32 %s621_s4, 4  ;;  %s409_s28 = int_to_ptr.vmem [resolvable:$true] %s408_s28 }
  0x26   :  { %340 = vmatpush.msrb.mxu3 %v194_v32  ;;  %361 = vmatpush.msra.mxu0 %v187_v37  ;;  %v213_v60 = vperm.slane %v205_v49, 6  ;;  %v214_v61 = vperm.slane %v205_v49, 7 }
  0x27   :  { %302 = vmatpush.msrb.mxu1 %v176_v26  ;;  %321 = vmatpush.msrb.mxu2 %v185_v35 }
  0x28   :  { %341 = vmatpush.msrb.mxu3 %v186_v36  ;;  %362 = vmatpush.msra.mxu0 %v179_v41 }
  0x29   :  { %322 = vmatpush.msrb.mxu2 %v177_v39 }
  0x2a   :  { %342 = vmatpush.msrb.mxu3 %v178_v40 }
  0x96   :  { %v130_v7 = vpop.f32.mrf.mxu0 }
  0x97   :  { %v131_v8 = vadd.f32 %v442_v6, %v130_v7  ;;  %v211_v6 = vperm.slane %v205_v49, 4  ;;  %v212_v7 = vperm.slane %v205_v49, 5 }
  0x99   :  { %v134_v9 = vmul.f32 0.2, %v131_v8  ;;  %vm133_vm1 = vcmp.gt.f32.partialorder %v131_v8, 0.0 }
  0x9b   :  { %v135_v10 = vsel %vm133_vm1, %v131_v8, %v134_v9 }
  0x9c   :  { %423 = vmatmul.msk.f32.vlgmr.msra.gmra.mxu1 %vm144_vm2, %v135_v10 }
  0x9d   :  { %379 = vmatpush.msra.mxu1 %v204_v30 }
  0x9f   :  { %380 = vmatpush.msra.mxu1 %v196_v34 }
  0xa1   :  { %381 = vmatpush.msra.mxu1 %v188_v38 }
  0xa3   :  { %382 = vmatpush.msra.mxu1 %v180_v42 }
 0x119   :  { %v165_v44 = vpop.f32.mrf.mxu1 }
 0x11a   :  { %v166_v45 = vadd.f32 %v443_v43, %v165_v44 }
 0x11c   :  { %vm168_vm3 = vcmp.gt.f32.partialorder %v166_v45, 0.0  ;;  %v169_v46 = vmul.f32 0.2, %v166_v45 }
 0x11e   :  { %v170_v47 = vsel %vm168_vm3, %v166_v45, %v169_v46 }
 0x11f   :  { %171 = vst.msk [vmem:[#allocation2] sm:$0xff] %vm144_vm2, %v170_v47 }
 0x126   :  { %v172_v48 = vld [vmem:[#allocation2] sm:$0xff] }
 0x127   :  { %424 = vmatmul.msk.f32.vlgmr.msra.gmra.mxu2 %vm144_vm2, %v172_v48  ;;  %425 = vmatmul.msk.f32.vlgmr.msra.gmra.mxu3 %vm144_vm2, %v172_v48 }
 0x128   :  { %426 = vmatmul.msk.f32.vlgmr.msrb.gmra.mxu0 %vm144_vm2, %v172_v48  ;;  %427 = vmatmul.msk.f32.vlgmr.msrb.gmra.mxu1 %vm144_vm2, %v172_v48 }
 0x12f   :  { %428 = vmatmul.msk.f32.vlgmr.msrb.gmra.mxu2 %vm144_vm2, %v172_v48  ;;  %429 = vmatmul.msk.f32.vlgmr.msrb.gmra.mxu3 %vm144_vm2, %v172_v48 }
 0x130   :  { %430 = vmatmul.msk.f32.vlgmr.msra.gmra.mxu0 %vm144_vm2, %v172_v48  ;;  %431 = vmatmul.msk.f32.vlgmr.msra.gmra.mxu1 %vm144_vm2, %v172_v48 }
 0x1a5   :  { %v284_v52 = vpop.f32.mrf.mxu0  ;;  %v304_v53 = vpop.f32.mrf.mxu1 }
 0x1a6   :  { %v285_v54 = vadd.f32 %v284_v52, %v209_v50  ;;  %v305_v55 = vadd.f32 %v304_v53, %v210_v51 }
 0x1a8   :  { %444 = vtanh.f32 %v285_v54 }
 0x1a9   :  { %446 = vtanh.f32 %v305_v55 }
 0x1aa   :  { %v244_v58 = vpop.f32.mrf.mxu2  ;;  %v264_v59 = vpop.f32.mrf.mxu3 }
 0x1ab   :  { %v245_v62 = vadd.f32 %v244_v58, %v207_v56  ;;  %v265_v63 = vadd.f32 %v264_v59, %v208_v57 }
 0x1ad   :  { %448 = vtanh.f32 %v245_v62  ;;  %v364_v0 = vpop.f32.mrf.mxu0  ;;  %v384_v1 = vpop.f32.mrf.mxu1 }
 0x1ae   :  { %v445_v2 = vpop.eup %444  ;;  %450 = vtanh.f32 %v265_v63  ;;  %v365_v3 = vadd.f32 %v364_v0, %v213_v60  ;;  %v385_v4 = vadd.f32 %v384_v1, %v214_v61 }
 0x1af   :  { %v447_v5 = vpop.eup %446  ;;  %397 = vst [vmem:[#allocation12 + $0x10] sm:$0xff] %v445_v2 }
 0x1b0   :  { %398 = vst [vmem:[#allocation12 + $0x18] sm:$0xff] %v447_v5  ;;  %452 = vtanh.f32 %v365_v3 }
 0x1b1   :  { %454 = vtanh.f32 %v385_v4 }
 0x1b2   :  { %v324_v8 = vpop.f32.mrf.mxu2  ;;  %v344_v9 = vpop.f32.mrf.mxu3 }
 0x1b3   :  { %v449_v10 = vpop.eup %448  ;;  %v325_v11 = vadd.f32 %v324_v8, %v211_v6  ;;  %v345_v12 = vadd.f32 %v344_v9, %v212_v7 }
 0x1b4   :  { %v451_v13 = vpop.eup %450  ;;  %395 = vst [vmem:[#allocation12] sm:$0xff] %v449_v10 }
 0x1b5   :  { %396 = vst [vmem:[#allocation12 + $0x8] sm:$0xff] %v451_v13  ;;  %456 = vtanh.f32 %v325_v11 }
 0x1b6   :  { %v453_v14 = vpop.eup %452  ;;  %458 = vtanh.f32 %v345_v12 }
 0x1b7   :  { %v455_v15 = vpop.eup %454  ;;  %401 = vst [vmem:[#allocation12 + $0x30] sm:$0xff] %v453_v14 }
 0x1b8   :  { %402 = vst [vmem:[#allocation12 + $0x38] sm:$0xff] %v455_v15 }
 0x1bb   :  { %v457_v16 = vpop.eup %456 }
 0x1bc   :  { %v459_v17 = vpop.eup %458  ;;  %399 = vst [vmem:[#allocation12 + $0x20] sm:$0xff] %v457_v16 }
 0x1bd   :  { %400 = vst [vmem:[#allocation12 + $0x28] sm:$0xff] %v459_v17 }
 0x1be   :  { %413 = dma.vmem_to_hbm [thread:$0]  %s409_s28, 1024, %s411_s8, [#allocation5]  }
 0x1bf   :  { %610 = dma.done.wait [#allocation5], 1024  }
 0x1c0   :  { %611 = vsyncadd [#allocation5], 4294966272 }
 0x1c1   :  { %418 = vsyncpa [#allocation4], 1 }
 0x1c2   :  { %419 = vsyncpa [#allocation7], 1 }
 0x1c3   :  { %420 = vsyncpa [#allocation10], 1 }
 0x1c4   :  { %421 = vsyncpa [#allocation5], 1 }

</bundles_post_ra>
